<compile_context>
chip_gen: v5e
topology: v5e:2x2
jax: 0.10.0
libtpu: 0.0.40
codegen_flags: <defaults>
</compile_context>

<pallas_src>
import functools

import jax
import jax.numpy as jnp
from jax.experimental import pallas as pl
from jax.experimental.pallas import tpu as pltpu


def _round_up(x, m):
    return ((x + m - 1) // m) * m


def quaternion_matrix_batched_kernel(q_ref, t_ref, r_ref):
    # q_ref: [16, BN]  (row-major flattened q, batch on lanes)
    # t_ref: [3,  BN]
    # r_ref: [16, BN]  (row-major flattened R, batch on lanes)
    one = jnp.float32(1.0)

    # Hoist the 9 distinct q entries once; each is a [BN] vector.
    q10 = q_ref[4, :]
    q11 = q_ref[5, :]
    q12 = q_ref[6, :]
    q13 = q_ref[7, :]
    q20 = q_ref[8, :]
    q22 = q_ref[10, :]
    q23 = q_ref[11, :]
    q30 = q_ref[12, :]
    q33 = q_ref[15, :]

    # Row 0 of R
    r_ref[0, :] = one - q22 - q33
    r_ref[1, :] = q12 - q30
    r_ref[2, :] = q13 + q20
    r_ref[3, :] = t_ref[0, :]
    # Row 1 of R
    r_ref[4, :] = q12 + q30
    r_ref[5, :] = one - q11 - q33
    r_ref[6, :] = q23 - q10
    r_ref[7, :] = t_ref[1, :]
    # Row 2 of R
    r_ref[8, :] = q13 - q20
    r_ref[9, :] = q23 + q10
    r_ref[10, :] = one - q11 - q22
    r_ref[11, :] = t_ref[2, :]
    # Row 3 of R (identity row of eye(4), untouched by the PyTorch module)
    zeros = jnp.zeros_like(q10)
    r_ref[12, :] = zeros
    r_ref[13, :] = zeros
    r_ref[14, :] = zeros
    r_ref[15, :] = zeros + one


@functools.partial(jax.jit, static_argnames=("block_n",))
def quaternion_matrix_batched(q, t, *, block_n=1024):
    """q: [N, 4, 4] float, t: [N, 3] float -> R: [N, 4, 4] float32."""
    q = q.astype(jnp.float32)
    t = t.astype(jnp.float32)
    n = q.shape[0]

    # Lane-dense layout: entries on sublanes, batch on lanes.
    q16 = q.reshape(n, 16).T            # [16, N]
    t3 = t.T                            # [3,  N]

    bn = min(block_n, _round_up(n, 128))
    n_pad = _round_up(n, bn)
    if n_pad != n:
        q16 = jnp.pad(q16, ((0, 0), (0, n_pad - n)))
        t3 = jnp.pad(t3, ((0, 0), (0, n_pad - n)))

    out = pl.pallas_call(
        quaternion_matrix_batched_kernel,
        out_shape=jax.ShapeDtypeStruct((16, n_pad), jnp.float32),
        grid=(n_pad // bn,),
        in_specs=[
            pl.BlockSpec((16, bn), lambda i: (0, i)),
            pl.BlockSpec((3, bn), lambda i: (0, i)),
        ],
        out_specs=pl.BlockSpec((16, bn), lambda i: (0, i)),
        compiler_params=pltpu.CompilerParams(
            dimension_semantics=("parallel",)),
    )(q16, t3)                          # [16, n_pad]

    return out[:, :n].T.reshape(n, 4, 4)


def quaternion_matrix(q, t):
    """Single-matrix entry point matching the PyTorch module: q [4,4], t [3]."""
    # NOTE: for a single 4x4 the Pallas launch overhead dominates; prefer the
    # fused pure-JAX quaternion_matrix_ref inside a larger jit if this op is
    # not batched.  Kept here via the batched kernel for a single code path.
    return quaternion_matrix_batched(q[None], t[None])[0]


def quaternion_matrix_ref(q, t):
    """Pure-JAX reference reproducing the PyTorch semantics (single matrix)."""
    q = q.astype(jnp.float32)
    t = t.astype(jnp.float32)
    R = jnp.eye(4, dtype=jnp.float32)
    R = R.at[0, 0].set(1.0 - q[2, 2] - q[3, 3])
    R = R.at[0, 1].set(q[1, 2] - q[3, 0])
    R = R.at[0, 2].set(q[1, 3] + q[2, 0])
    R = R.at[1, 0].set(q[1, 2] + q[3, 0])
    R = R.at[1, 1].set(1.0 - q[1, 1] - q[3, 3])
    R = R.at[1, 2].set(q[2, 3] - q[1, 0])
    R = R.at[2, 0].set(q[1, 3] - q[2, 0])
    R = R.at[2, 1].set(q[2, 3] + q[1, 0])
    R = R.at[2, 2].set(1.0 - q[1, 1] - q[2, 2])
    R = R.at[0, 3].set(t[0])
    R = R.at[1, 3].set(t[1])
    R = R.at[2, 3].set(t[2])
    return R


if __name__ == "__main__":
    key = jax.random.PRNGKey(0)
    kq, kt = jax.random.split(key)

    # Small batched inputs consistent with the module's per-sample shapes.
    N = 8
    qb = jax.random.normal(kq, (N, 4, 4), dtype=jnp.float32)
    tb = jax.random.normal(kt, (N, 3), dtype=jnp.float32)

    Rb = jax.block_until_ready(quaternion_matrix_batched(qb, tb))
    Rb_ref = jax.vmap(quaternion_matrix_ref)(qb, tb)
    assert Rb.shape == (N, 4, 4) and Rb.dtype == jnp.float32
    assert jnp.allclose(Rb, Rb_ref, atol=1e-6), (Rb, Rb_ref)

    # Single-matrix path matching the original PyTorch module signature.
    R = jax.block_until_ready(quaternion_matrix(qb[0], tb[0]))
    R_ref = quaternion_matrix_ref(qb[0], tb[0])
    assert R.shape == (4, 4) and R.dtype == jnp.float32
    assert jnp.allclose(R, R_ref, atol=1e-6), (R, R_ref)

    print("KERNEL_OK")
</pallas_src>

<mosaic_0001>
module attributes {stable_mosaic.version = 11 : i64} {
  func.func @quaternion_matrix_batched_kernel(%arg0: i32, %arg1: memref<16x128xf32, #tpu.memory_space<vmem>>, %arg2: memref<3x128xf32, #tpu.memory_space<vmem>>, %arg3: memref<16x128xf32, #tpu.memory_space<vmem>>) attributes {dimension_semantics = [#tpu.dimension_semantics<parallel>], iteration_bounds = array<i64: 1>, scalar_prefetch = 0 : i64, scratch_operands = 0 : i64, tpu.core_type = #tpu.core_type<tc>, window_params = [{transform_indices = @transform_0, window_bounds = array<i64: 16, 128>}, {transform_indices = @transform_1, window_bounds = array<i64: 3, 128>}, {transform_indices = @transform_2, window_bounds = array<i64: 16, 128>}]} {
    %c4 = arith.constant 4 : index
    %c0 = arith.constant 0 : index
    %0 = vector.load %arg1[%c4, %c0] : memref<16x128xf32, #tpu.memory_space<vmem>>, vector<1x128xf32>
    %1 = vector.shape_cast %0 : vector<1x128xf32> to vector<128xf32>
    %c5 = arith.constant 5 : index
    %c0_0 = arith.constant 0 : index
    %2 = vector.load %arg1[%c5, %c0_0] : memref<16x128xf32, #tpu.memory_space<vmem>>, vector<1x128xf32>
    %3 = vector.shape_cast %2 : vector<1x128xf32> to vector<128xf32>
    %c6 = arith.constant 6 : index
    %c0_1 = arith.constant 0 : index
    %4 = vector.load %arg1[%c6, %c0_1] : memref<16x128xf32, #tpu.memory_space<vmem>>, vector<1x128xf32>
    %5 = vector.shape_cast %4 : vector<1x128xf32> to vector<128xf32>
    %c7 = arith.constant 7 : index
    %c0_2 = arith.constant 0 : index
    %6 = vector.load %arg1[%c7, %c0_2] : memref<16x128xf32, #tpu.memory_space<vmem>>, vector<1x128xf32>
    %7 = vector.shape_cast %6 : vector<1x128xf32> to vector<128xf32>
    %c8 = arith.constant 8 : index
    %c0_3 = arith.constant 0 : index
    %8 = vector.load %arg1[%c8, %c0_3] : memref<16x128xf32, #tpu.memory_space<vmem>>, vector<1x128xf32>
    %9 = vector.shape_cast %8 : vector<1x128xf32> to vector<128xf32>
    %c10 = arith.constant 10 : index
    %c0_4 = arith.constant 0 : index
    %10 = vector.load %arg1[%c10, %c0_4] : memref<16x128xf32, #tpu.memory_space<vmem>>, vector<1x128xf32>
    %11 = vector.shape_cast %10 : vector<1x128xf32> to vector<128xf32>
    %c11 = arith.constant 11 : index
    %c0_5 = arith.constant 0 : index
    %12 = vector.load %arg1[%c11, %c0_5] : memref<16x128xf32, #tpu.memory_space<vmem>>, vector<1x128xf32>
    %13 = vector.shape_cast %12 : vector<1x128xf32> to vector<128xf32>
    %c12 = arith.constant 12 : index
    %c0_6 = arith.constant 0 : index
    %14 = vector.load %arg1[%c12, %c0_6] : memref<16x128xf32, #tpu.memory_space<vmem>>, vector<1x128xf32>
    %15 = vector.shape_cast %14 : vector<1x128xf32> to vector<128xf32>
    %c15 = arith.constant 15 : index
    %c0_7 = arith.constant 0 : index
    %16 = vector.load %arg1[%c15, %c0_7] : memref<16x128xf32, #tpu.memory_space<vmem>>, vector<1x128xf32>
    %17 = vector.shape_cast %16 : vector<1x128xf32> to vector<128xf32>
    %cst = arith.constant 1.000000e+00 : f32
    %18 = vector.broadcast %cst : f32 to vector<128xf32>
    %19 = arith.subf %18, %11 : vector<128xf32>
    %20 = arith.subf %19, %17 : vector<128xf32>
    %c0_8 = arith.constant 0 : index
    %c0_9 = arith.constant 0 : index
    %21 = vector.load %arg3[%c0_8, %c0_9] : memref<16x128xf32, #tpu.memory_space<vmem>>, vector<1x128xf32>
    %22 = vector.shape_cast %21 : vector<1x128xf32> to vector<128xf32>
    %23 = vector.shape_cast %20 : vector<128xf32> to vector<1x128xf32>
    tpu.vector_store %arg3[%c0_8, %c0_9], %23 {strides = array<i32>} : memref<16x128xf32, #tpu.memory_space<vmem>>, vector<1x128xf32>,
    %24 = arith.subf %5, %15 : vector<128xf32>
    %c1 = arith.constant 1 : index
    %c0_10 = arith.constant 0 : index
    %25 = vector.load %arg3[%c1, %c0_10] : memref<16x128xf32, #tpu.memory_space<vmem>>, vector<1x128xf32>
    %26 = vector.shape_cast %25 : vector<1x128xf32> to vector<128xf32>
    %27 = vector.shape_cast %24 : vector<128xf32> to vector<1x128xf32>
    tpu.vector_store %arg3[%c1, %c0_10], %27 {strides = array<i32>} : memref<16x128xf32, #tpu.memory_space<vmem>>, vector<1x128xf32>,
    %28 = arith.addf %7, %9 : vector<128xf32>
    %c2 = arith.constant 2 : index
    %c0_11 = arith.constant 0 : index
    %29 = vector.load %arg3[%c2, %c0_11] : memref<16x128xf32, #tpu.memory_space<vmem>>, vector<1x128xf32>
    %30 = vector.shape_cast %29 : vector<1x128xf32> to vector<128xf32>
    %31 = vector.shape_cast %28 : vector<128xf32> to vector<1x128xf32>
    tpu.vector_store %arg3[%c2, %c0_11], %31 {strides = array<i32>} : memref<16x128xf32, #tpu.memory_space<vmem>>, vector<1x128xf32>,
    %c0_12 = arith.constant 0 : index
    %c0_13 = arith.constant 0 : index
    %32 = vector.load %arg2[%c0_12, %c0_13] : memref<3x128xf32, #tpu.memory_space<vmem>>, vector<1x128xf32>
    %33 = vector.shape_cast %32 : vector<1x128xf32> to vector<128xf32>
    %c3 = arith.constant 3 : index
    %c0_14 = arith.constant 0 : index
    %34 = vector.load %arg3[%c3, %c0_14] : memref<16x128xf32, #tpu.memory_space<vmem>>, vector<1x128xf32>
    %35 = vector.shape_cast %34 : vector<1x128xf32> to vector<128xf32>
    %36 = vector.shape_cast %33 : vector<128xf32> to vector<1x128xf32>
    tpu.vector_store %arg3[%c3, %c0_14], %36 {strides = array<i32>} : memref<16x128xf32, #tpu.memory_space<vmem>>, vector<1x128xf32>,
    %37 = arith.addf %5, %15 : vector<128xf32>
    %c4_15 = arith.constant 4 : index
    %c0_16 = arith.constant 0 : index
    %38 = vector.load %arg3[%c4_15, %c0_16] : memref<16x128xf32, #tpu.memory_space<vmem>>, vector<1x128xf32>
    %39 = vector.shape_cast %38 : vector<1x128xf32> to vector<128xf32>
    %40 = vector.shape_cast %37 : vector<128xf32> to vector<1x128xf32>
    tpu.vector_store %arg3[%c4_15, %c0_16], %40 {strides = array<i32>} : memref<16x128xf32, #tpu.memory_space<vmem>>, vector<1x128xf32>,
    %cst_17 = arith.constant 1.000000e+00 : f32
    %41 = vector.broadcast %cst_17 : f32 to vector<128xf32>
    %42 = arith.subf %41, %3 : vector<128xf32>
    %43 = arith.subf %42, %17 : vector<128xf32>
    %c5_18 = arith.constant 5 : index
    %c0_19 = arith.constant 0 : index
    %44 = vector.load %arg3[%c5_18, %c0_19] : memref<16x128xf32, #tpu.memory_space<vmem>>, vector<1x128xf32>
    %45 = vector.shape_cast %44 : vector<1x128xf32> to vector<128xf32>
    %46 = vector.shape_cast %43 : vector<128xf32> to vector<1x128xf32>
    tpu.vector_store %arg3[%c5_18, %c0_19], %46 {strides = array<i32>} : memref<16x128xf32, #tpu.memory_space<vmem>>, vector<1x128xf32>,
    %47 = arith.subf %13, %1 : vector<128xf32>
    %c6_20 = arith.constant 6 : index
    %c0_21 = arith.constant 0 : index
    %48 = vector.load %arg3[%c6_20, %c0_21] : memref<16x128xf32, #tpu.memory_space<vmem>>, vector<1x128xf32>
    %49 = vector.shape_cast %48 : vector<1x128xf32> to vector<128xf32>
    %50 = vector.shape_cast %47 : vector<128xf32> to vector<1x128xf32>
    tpu.vector_store %arg3[%c6_20, %c0_21], %50 {strides = array<i32>} : memref<16x128xf32, #tpu.memory_space<vmem>>, vector<1x128xf32>,
    %c1_22 = arith.constant 1 : index
    %c0_23 = arith.constant 0 : index
    %51 = vector.load %arg2[%c1_22, %c0_23] : memref<3x128xf32, #tpu.memory_space<vmem>>, vector<1x128xf32>
    %52 = vector.shape_cast %51 : vector<1x128xf32> to vector<128xf32>
    %c7_24 = arith.constant 7 : index
    %c0_25 = arith.constant 0 : index
    %53 = vector.load %arg3[%c7_24, %c0_25] : memref<16x128xf32, #tpu.memory_space<vmem>>, vector<1x128xf32>
    %54 = vector.shape_cast %53 : vector<1x128xf32> to vector<128xf32>
    %55 = vector.shape_cast %52 : vector<128xf32> to vector<1x128xf32>
    tpu.vector_store %arg3[%c7_24, %c0_25], %55 {strides = array<i32>} : memref<16x128xf32, #tpu.memory_space<vmem>>, vector<1x128xf32>,
    %56 = arith.subf %7, %9 : vector<128xf32>
    %c8_26 = arith.constant 8 : index
    %c0_27 = arith.constant 0 : index
    %57 = vector.load %arg3[%c8_26, %c0_27] : memref<16x128xf32, #tpu.memory_space<vmem>>, vector<1x128xf32>
    %58 = vector.shape_cast %57 : vector<1x128xf32> to vector<128xf32>
    %59 = vector.shape_cast %56 : vector<128xf32> to vector<1x128xf32>
    tpu.vector_store %arg3[%c8_26, %c0_27], %59 {strides = array<i32>} : memref<16x128xf32, #tpu.memory_space<vmem>>, vector<1x128xf32>,
    %60 = arith.addf %13, %1 : vector<128xf32>
    %c9 = arith.constant 9 : index
    %c0_28 = arith.constant 0 : index
    %61 = vector.load %arg3[%c9, %c0_28] : memref<16x128xf32, #tpu.memory_space<vmem>>, vector<1x128xf32>
    %62 = vector.shape_cast %61 : vector<1x128xf32> to vector<128xf32>
    %63 = vector.shape_cast %60 : vector<128xf32> to vector<1x128xf32>
    tpu.vector_store %arg3[%c9, %c0_28], %63 {strides = array<i32>} : memref<16x128xf32, #tpu.memory_space<vmem>>, vector<1x128xf32>,
    %cst_29 = arith.constant 1.000000e+00 : f32
    %64 = vector.broadcast %cst_29 : f32 to vector<128xf32>
    %65 = arith.subf %64, %3 : vector<128xf32>
    %66 = arith.subf %65, %11 : vector<128xf32>
    %c10_30 = arith.constant 10 : index
    %c0_31 = arith.constant 0 : index
    %67 = vector.load %arg3[%c10_30, %c0_31] : memref<16x128xf32, #tpu.memory_space<vmem>>, vector<1x128xf32>
    %68 = vector.shape_cast %67 : vector<1x128xf32> to vector<128xf32>
    %69 = vector.shape_cast %66 : vector<128xf32> to vector<1x128xf32>
    tpu.vector_store %arg3[%c10_30, %c0_31], %69 {strides = array<i32>} : memref<16x128xf32, #tpu.memory_space<vmem>>, vector<1x128xf32>,
    %c2_32 = arith.constant 2 : index
    %c0_33 = arith.constant 0 : index
    %70 = vector.load %arg2[%c2_32, %c0_33] : memref<3x128xf32, #tpu.memory_space<vmem>>, vector<1x128xf32>
    %71 = vector.shape_cast %70 : vector<1x128xf32> to vector<128xf32>
    %c11_34 = arith.constant 11 : index
    %c0_35 = arith.constant 0 : index
    %72 = vector.load %arg3[%c11_34, %c0_35] : memref<16x128xf32, #tpu.memory_space<vmem>>, vector<1x128xf32>
    %73 = vector.shape_cast %72 : vector<1x128xf32> to vector<128xf32>
    %74 = vector.shape_cast %71 : vector<128xf32> to vector<1x128xf32>
    tpu.vector_store %arg3[%c11_34, %c0_35], %74 {strides = array<i32>} : memref<16x128xf32, #tpu.memory_space<vmem>>, vector<1x128xf32>,
    %cst_36 = arith.constant 0.000000e+00 : f32
    %75 = vector.broadcast %cst_36 : f32 to vector<128xf32>
    %c12_37 = arith.constant 12 : index
    %c0_38 = arith.constant 0 : index
    %76 = vector.load %arg3[%c12_37, %c0_38] : memref<16x128xf32, #tpu.memory_space<vmem>>, vector<1x128xf32>
    %77 = vector.shape_cast %76 : vector<1x128xf32> to vector<128xf32>
    %78 = vector.shape_cast %75 : vector<128xf32> to vector<1x128xf32>
    tpu.vector_store %arg3[%c12_37, %c0_38], %78 {strides = array<i32>} : memref<16x128xf32, #tpu.memory_space<vmem>>, vector<1x128xf32>,
    %c13 = arith.constant 13 : index
    %c0_39 = arith.constant 0 : index
    %79 = vector.load %arg3[%c13, %c0_39] : memref<16x128xf32, #tpu.memory_space<vmem>>, vector<1x128xf32>
    %80 = vector.shape_cast %79 : vector<1x128xf32> to vector<128xf32>
    %81 = vector.shape_cast %75 : vector<128xf32> to vector<1x128xf32>
    tpu.vector_store %arg3[%c13, %c0_39], %81 {strides = array<i32>} : memref<16x128xf32, #tpu.memory_space<vmem>>, vector<1x128xf32>,
    %c14 = arith.constant 14 : index
    %c0_40 = arith.constant 0 : index
    %82 = vector.load %arg3[%c14, %c0_40] : memref<16x128xf32, #tpu.memory_space<vmem>>, vector<1x128xf32>
    %83 = vector.shape_cast %82 : vector<1x128xf32> to vector<128xf32>
    %84 = vector.shape_cast %75 : vector<128xf32> to vector<1x128xf32>
    tpu.vector_store %arg3[%c14, %c0_40], %84 {strides = array<i32>} : memref<16x128xf32, #tpu.memory_space<vmem>>, vector<1x128xf32>,
    %cst_41 = arith.constant 1.000000e+00 : f32
    %85 = vector.broadcast %cst_41 : f32 to vector<128xf32>
    %86 = arith.addf %75, %85 : vector<128xf32>
    %c15_42 = arith.constant 15 : index
    %c0_43 = arith.constant 0 : index
    %87 = vector.load %arg3[%c15_42, %c0_43] : memref<16x128xf32, #tpu.memory_space<vmem>>, vector<1x128xf32>
    %88 = vector.shape_cast %87 : vector<1x128xf32> to vector<128xf32>
    %89 = vector.shape_cast %86 : vector<128xf32> to vector<1x128xf32>
    tpu.vector_store %arg3[%c15_42, %c0_43], %89 {strides = array<i32>} : memref<16x128xf32, #tpu.memory_space<vmem>>, vector<1x128xf32>,
    return
  }
  func.func @transform_0(%arg0: i32) -> (i32, i32) {
    %c0_i32 = arith.constant 0 : i32
    %c0_i32_0 = arith.constant 0 : i32
    return %c0_i32, %arg0 : i32, i32
  }
  func.func @transform_1(%arg0: i32) -> (i32, i32) {
    %c0_i32 = arith.constant 0 : i32
    %c0_i32_0 = arith.constant 0 : i32
    return %c0_i32, %arg0 : i32, i32
  }
  func.func @transform_2(%arg0: i32) -> (i32, i32) {
    %c0_i32 = arith.constant 0 : i32
    %c0_i32_0 = arith.constant 0 : i32
    return %c0_i32, %arg0 : i32, i32
  }
}

</mosaic_0001>

<bundles_post_ra>
// kernel: quaternion_matrix_batched.1
= control target key start
LH: loop header
LB: loop body
LE: loop exit
PB: predicated region body
PF: predicated region fallthrough
CT: control target
= control target key end

     0   :  { %s159_s0 = inlined_call_operand.vmem [shape: f32[16,128], index: 0, kind: input, shape index: {}]   ;;  %s160_s1 = inlined_call_operand.vmem [shape: f32[3,128], index: 1, kind: input, shape index: {}]   ;;  %s161_s2 = inlined_call_operand.hbm [shape: f32[16,128], index: 2, kind: output, shape index: {}]  }
   0x1   :  { %v17_v0 = vld [vmem:[%s159_s0 + $0xa] sm:$0x1]  ;;  %v20_v1 = vld [vmem:[%s159_s0 + $0xf] sm:$0x1]  ;;  %v14_v2 = vld [vmem:[%s159_s0 + $0x6] sm:$0x1] }
   0x2   :  { %v21_v3 = vsub.f32 1.0, %v17_v0  ;;  %v19_v4 = vld [vmem:[%s159_s0 + $0xc] sm:$0x1]  ;;  %v15_v5 = vld [vmem:[%s159_s0 + $0x7] sm:$0x1] }
   0x3   :  { %v24_v6 = vsub.f32 %v14_v2, %v19_v4  ;;  %v16_v7 = vld [vmem:[%s159_s0 + $0x8] sm:$0x1]  ;;  %v28_v8 = vld [vmem:[%s160_s1] sm:$0x1]  ;;  %v13_v9 = vld [vmem:[%s159_s0 + $0x5] sm:$0x1]  ;;  %v30_v12 = vadd.f32 %v19_v4, %v14_v2 }
   0x4   :  { %v22_v10 = vsub.f32 %v21_v3, %v20_v1  ;;  %v26_v11 = vadd.f32 %v16_v7, %v15_v5  ;;  %29 = vst [vmem:[#allocation2 + $0x3] sm:$0x1] %v28_v8  ;;  %v32_v13 = vsub.f32 1.0, %v13_v9  ;;  %v12_v14 = vld [vmem:[%s159_s0 + $0x4] sm:$0x1] }
   0x5   :  { %25 = vst [vmem:[#allocation2 + $0x1] sm:$0x1] %v24_v6  ;;  %v18_v15 = vld [vmem:[%s159_s0 + $0xb] sm:$0x1] }
   0x6   :  { %23 = vst [vmem:[#allocation2] sm:$0x1] %v22_v10  ;;  %v33_v16 = vsub.f32 %v32_v13, %v20_v1  ;;  %v35_v17 = vsub.f32 %v18_v15, %v12_v14 }
   0x7   :  { %7 = vsyncpa [#allocation3], 0  ;;  %27 = vst [vmem:[#allocation2 + $0x2] sm:$0x1] %v26_v11  ;;  %v37_v18 = vld [vmem:[%s160_s1 + $0x1] sm:$0x1]  ;;  %v39_v19 = vsub.f32 %v15_v5, %v16_v7  ;;  %v41_v20 = vadd.f32 %v18_v15, %v12_v14  ;;  %v43_v21 = vsub.f32 %v32_v13, %v17_v0 }
   0x8   :  { %31 = vst [vmem:[#allocation2 + $0x4] sm:$0x1] %v30_v12  ;;  %v45_v22 = vld [vmem:[%s160_s1 + $0x2] sm:$0x1]  ;;  %s100_s0 = smov [#allocation2]   ;;  %s57_s8 = sshll.u32 %s161_s2, 4  ;;  %s58_s8 = int_to_ptr.hbm [resolvable:$true] %s57_s8 }
   0x9   :  { %34 = vst [vmem:[#allocation2 + $0x5] sm:$0x1] %v33_v16  ;;  %s55_s5 = sshll.u32 %s100_s0, 4  ;;  %v101_v23 = vmov 0.0   ;;  %v102_v24 = vmov 1.0   ;;  %s103_s9 = smov 128   ;;  %s56_s5 = int_to_ptr.vmem [resolvable:$true] %s55_s5 }
   0xa   :  { %36 = vst [vmem:[#allocation2 + $0x6] sm:$0x1] %v35_v17  ;;  %s104_s10 = smov 8  }
   0xb   :  { %38 = vst [vmem:[#allocation2 + $0x7] sm:$0x1] %v37_v18 }
   0xc   :  { %40 = vst [vmem:[#allocation2 + $0x8] sm:$0x1] %v39_v19 }
   0xd   :  { %42 = vst [vmem:[#allocation2 + $0x9] sm:$0x1] %v41_v20 }
   0xe   :  { %44 = vst [vmem:[#allocation2 + $0xa] sm:$0x1] %v43_v21 }
   0xf   :  { %46 = vst [vmem:[#allocation2 + $0xb] sm:$0x1] %v45_v22 }
  0x10   :  { %47 = vst [vmem:[#allocation2 + $0xc] sm:$0x1] %v101_v23 }
  0x11   :  { %48 = vst [vmem:[#allocation2 + $0xd] sm:$0x1] %v101_v23 }
  0x12   :  { %49 = vst [vmem:[#allocation2 + $0xe] sm:$0x1] %v101_v23 }
  0x13   :  { %50 = vst [vmem:[#allocation2 + $0xf] sm:$0x1] %v102_v24 }
  0x14   :  { %63 = dma.vmem_to_hbm [thread:$0]  %s56_s5, 256, %s58_s8, [#allocation3], %s103_s9, %s103_s9, %s104_s10  }
  0x15   :  { %98 = dma.done.wait [#allocation3], 256  }
  0x16   :  { %99 = vsyncadd [#allocation3], 4294967040 }
  0x17   :  { %68 = vsyncpa [#allocation3], 1 }

</bundles_post_ra>
